<compile_context>
chip_gen: v7x
topology: tpu7x:2x2x1
jax: 0.10.0
libtpu: 0.0.40
codegen_flags: <defaults>
</compile_context>

<pallas_src>
import functools

import jax
import jax.numpy as jnp
from jax.experimental import pallas as pl
from jax.experimental.pallas import tpu as pltpu


def _round_up(n, m):
    return pl.cdiv(n, m) * m


# ---------------------------------------------------------------------------
# Fused kernel: encoder MLP -> (means, log_var) -> reparameterize -> decoder.
# All layer weights/biases come in as two packed, 128-aligned slabs.
# ---------------------------------------------------------------------------
def cvae_kernel(acts_ref, w_ref, b_ref, out_ref, *, seg, n_enc, n_dec):
    def wseg(i):
        return w_ref[:, i * seg:(i + 1) * seg]

    def bseg(i):
        return b_ref[:, i * seg:(i + 1) * seg]

    def dense(x, i, relu):
        y = jnp.dot(x, wseg(i), preferred_element_type=jnp.float32) + bseg(i)
        return jnp.maximum(y, 0.0) if relu else y

    # 128-aligned views into the packed activation slab.
    enc_in = acts_ref[:, 0 * seg:1 * seg]   # [x | c | 0...]
    eps    = acts_ref[:, 1 * seg:2 * seg]   # [eps | 0...]
    c_dec  = acts_ref[:, 2 * seg:3 * seg]   # [0_latent | c | 0...]

    # ---- Encoder MLP (ReLU; dropout_rate=0.0 -> identity) -----------------
    h = enc_in
    for i in range(n_enc):
        h = dense(h, i, relu=True)

    # ---- Heads (each its own 128-aligned segment -> free "split") ---------
    means   = dense(h, n_enc, relu=False)        # (BM, seg), zeros past latent
    log_var = dense(h, n_enc + 1, relu=False)    # (BM, seg), zeros past latent

    # ---- Reparameterize: padding lanes stay 0 (0 + 0*exp(0.5*0) = 0) ------
    z = means + eps * jnp.exp(0.5 * log_var)

    # ---- Decoder: [z | c] formed by one aligned add (no lane rotates) -----
    g = z + c_dec
    for i in range(n_dec):
        g = dense(g, n_enc + 2 + i, relu=True)
    recon = dense(g, n_enc + 2 + n_dec, relu=False)

    # ---- Lane-dense output slab: full-width 128-aligned unmasked stores ---
    out_ref[:, 0 * seg:1 * seg] = recon
    out_ref[:, 1 * seg:2 * seg] = means
    out_ref[:, 2 * seg:3 * seg] = log_var
    out_ref[:, 3 * seg:4 * seg] = z


# ---------------------------------------------------------------------------
# Parameter construction (mirrors nn.Linear default init and
# Encoder._init_log_var_weights).  Weights are stored (in, out) and packed
# ONCE here into the two slabs consumed by the kernel.
# ---------------------------------------------------------------------------
def linear_params(key, in_dim, out_dim):
    """PyTorch nn.Linear default init: U(-1/sqrt(in), 1/sqrt(in))."""
    kw, kb = jax.random.split(key)
    bound = 1.0 / jnp.sqrt(jnp.float32(in_dim))
    w = jax.random.uniform(kw, (in_dim, out_dim), jnp.float32, -bound, bound)
    b = jax.random.uniform(kb, (out_dim,), jnp.float32, -bound, bound)
    return w, b


def make_cvae_params(key, x_dim, c_dim, enc_hidden, dec_hidden, latent_size):
    n_enc, n_dec = len(enc_hidden), len(dec_hidden)
    n_layers = n_enc + n_dec + 3
    keys = iter(jax.random.split(key, n_layers))

    layers = []  # (w, b) in kernel-segment order

    # Encoder MLP
    in_dim = x_dim + c_dim
    for h in enc_hidden:
        layers.append(linear_params(next(keys), in_dim, h))
        in_dim = h
    # means head
    layers.append(linear_params(next(keys), enc_hidden[-1], latent_size))
    # log_var head: weight ~ U(-0.01, 0.01), bias = 0
    wv = jax.random.uniform(next(keys), (enc_hidden[-1], latent_size),
                            jnp.float32, -0.01, 0.01)
    layers.append((wv, jnp.zeros((latent_size,), jnp.float32)))
    # Decoder MLP
    in_dim = latent_size + c_dim
    for h in dec_hidden:
        layers.append(linear_params(next(keys), in_dim, h))
        in_dim = h
    # Decoder output layer
    layers.append(linear_params(next(keys), dec_hidden[-1], x_dim))

    max_dim = max(max(w.shape) for w, _ in layers)
    seg = int(_round_up(max_dim, 128))          # 128-aligned segment width

    w_all = jnp.zeros((seg, n_layers * seg), jnp.float32)
    b_all = jnp.zeros((1, n_layers * seg), jnp.float32)
    for i, (w, b) in enumerate(layers):
        w_all = w_all.at[:w.shape[0], i * seg:i * seg + w.shape[1]].set(w)
        b_all = b_all.at[0, i * seg:i * seg + b.shape[0]].set(b)

    return dict(w_all=w_all, b_all=b_all, seg=seg,
                n_enc=n_enc, n_dec=n_dec, layers=layers)


# ---------------------------------------------------------------------------
# Wrapper: full CVAE forward in one pallas_call (batch-tiled, parallel grid).
# ---------------------------------------------------------------------------
@functools.partial(jax.jit, static_argnames=("n_enc", "n_dec"))
def _cvae_forward(w_all, b_all, x, c, eps, *, n_enc, n_dec):
    seg = w_all.shape[0]
    n_layers = n_enc + n_dec + 3
    B, x_dim = x.shape
    c_dim = c.shape[1]
    latent = eps.shape[1]

    # Batch tile: 8-row granularity for tiny batches, 256 rows at scale.
    bm = int(min(256, _round_up(B, 8)))
    b_pad = int(_round_up(B, bm))

    # Packed activation slab (one input DMA instead of three).
    acts = jnp.zeros((b_pad, 3 * seg), jnp.float32)
    acts = acts.at[:B, 0:x_dim].set(x)
    acts = acts.at[:B, x_dim:x_dim + c_dim].set(c)
    acts = acts.at[:B, seg:seg + latent].set(eps)
    acts = acts.at[:B, 2 * seg + latent:2 * seg + latent + c_dim].set(c)

    kernel = functools.partial(cvae_kernel, seg=seg, n_enc=n_enc, n_dec=n_dec)

    packed = pl.pallas_call(
        kernel,
        out_shape=jax.ShapeDtypeStruct((b_pad, 4 * seg), jnp.float32),
        grid=(b_pad // bm,),
        in_specs=[
            pl.BlockSpec((bm, 3 * seg), lambda i: (i, 0)),          # activations
            pl.BlockSpec((seg, n_layers * seg), lambda i: (0, 0)),  # weights (resident)
            pl.BlockSpec((1, n_layers * seg), lambda i: (0, 0)),    # biases (resident)
        ],
        out_specs=pl.BlockSpec((bm, 4 * seg), lambda i: (i, 0)),
        compiler_params=pltpu.CompilerParams(
            dimension_semantics=("parallel",)),
        # TODO(synk): at very large B consider bf16 activations/weights with
        # f32 accumulation (v6e/v7x MXU) — kept f32 here for v5e VPU/EUP.
    )(acts, w_all, b_all)

    recon_x = packed[:B, 0:x_dim]
    means   = packed[:B, 1 * seg:1 * seg + latent]
    log_var = packed[:B, 2 * seg:2 * seg + latent]
    z       = packed[:B, 3 * seg:3 * seg + latent]
    return recon_x, means, log_var, z


def cvae_forward(params, x, c, eps):
    return _cvae_forward(params["w_all"], params["b_all"], x, c, eps,
                         n_enc=params["n_enc"], n_dec=params["n_dec"])


# ---------------------------------------------------------------------------
# Pure-JAX reference (same math as the PyTorch module).
# ---------------------------------------------------------------------------
def cvae_forward_ref(params, x, c, eps):
    layers = params["layers"]
    n_enc, n_dec = params["n_enc"], params["n_dec"]
    idx = 0

    h = jnp.concatenate([x, c], axis=-1)
    for _ in range(n_enc):
        w, b = layers[idx]; idx += 1
        h = jax.nn.relu(h @ w + b)
    wm, bm = layers[idx]; idx += 1
    wv, bv = layers[idx]; idx += 1
    means = h @ wm + bm
    log_var = h @ wv + bv
    z = means + eps * jnp.exp(0.5 * log_var)

    g = jnp.concatenate([z, c], axis=-1)
    for _ in range(n_dec):
        w, b = layers[idx]; idx += 1
        g = jax.nn.relu(g @ w + b)
    wo, bo = layers[idx]
    recon_x = g @ wo + bo
    return recon_x, means, log_var, z


# ---------------------------------------------------------------------------
if __name__ == "__main__":
    B = 8               # batch
    x_dim = 16          # input variable dimension
    c_dim = 8           # conditioned variable dimension
    latent_size = 8
    enc_hidden = (32, 32)
    dec_hidden = (32, 32)

    root = jax.random.PRNGKey(0)
    k_params, k_x, k_c, k_eps = jax.random.split(root, 4)

    params = make_cvae_params(k_params, x_dim, c_dim, enc_hidden, dec_hidden,
                              latent_size)

    x = jax.random.normal(k_x, (B, x_dim), jnp.float32)
    c = jax.random.normal(k_c, (B, c_dim), jnp.float32)
    # eps plays the role of torch.randn_like(std) in reparameterize.
    eps = jax.random.normal(k_eps, (B, latent_size), jnp.float32)

    out = cvae_forward(params, x, c, eps)
    jax.block_until_ready(out)
    recon_x, means, log_var, z = out

    r_ref, m_ref, lv_ref, z_ref = cvae_forward_ref(params, x, c, eps)
    assert recon_x.shape == (B, x_dim)
    assert means.shape == (B, latent_size)
    assert log_var.shape == (B, latent_size)
    assert z.shape == (B, latent_size)
    assert jnp.allclose(means, m_ref, atol=1e-5, rtol=1e-5)
    assert jnp.allclose(log_var, lv_ref, atol=1e-5, rtol=1e-5)
    assert jnp.allclose(z, z_ref, atol=1e-5, rtol=1e-5)
    assert jnp.allclose(recon_x, r_ref, atol=1e-5, rtol=1e-5)

    print("KERNEL_OK")
</pallas_src>

<mosaic_0001>
module attributes {stable_mosaic.version = 11 : i64} {
  func.func @cvae_kernel(%arg0: i32, %arg1: memref<8x384xf32, #tpu.memory_space<vmem>>, %arg2: memref<128x896xf32, #tpu.memory_space<vmem>>, %arg3: memref<1x896xf32, #tpu.memory_space<vmem>>, %arg4: memref<8x512xf32, #tpu.memory_space<vmem>>) attributes {dimension_semantics = [#tpu.dimension_semantics<parallel>], iteration_bounds = array<i64: 1>, scalar_prefetch = 0 : i64, scratch_operands = 0 : i64, tpu.core_type = #tpu.core_type<tc>, window_params = [{transform_indices = @transform_0, window_bounds = array<i64: 8, 384>}, {pipeline_mode = #tpu.pipeline_mode<synchronous>, transform_indices = @transform_1, window_bounds = array<i64: 128, 896>}, {pipeline_mode = #tpu.pipeline_mode<synchronous>, transform_indices = @transform_2, window_bounds = array<i64: 1, 896>}, {transform_indices = @transform_3, window_bounds = array<i64: 8, 512>}]} {
    %c0 = arith.constant 0 : index
    %c0_0 = arith.constant 0 : index
    %0 = vector.load %arg1[%c0, %c0_0] : memref<8x384xf32, #tpu.memory_space<vmem>>, vector<8x128xf32>
    %c0_1 = arith.constant 0 : index
    %c128 = arith.constant 128 : index
    %1 = vector.load %arg1[%c0_1, %c128] : memref<8x384xf32, #tpu.memory_space<vmem>>, vector<8x128xf32>
    %c0_2 = arith.constant 0 : index
    %c256 = arith.constant 256 : index
    %2 = vector.load %arg1[%c0_2, %c256] : memref<8x384xf32, #tpu.memory_space<vmem>>, vector<8x128xf32>
    %c0_3 = arith.constant 0 : index
    %c0_4 = arith.constant 0 : index
    %3 = vector.load %arg2[%c0_3, %c0_4] : memref<128x896xf32, #tpu.memory_space<vmem>>, vector<128x128xf32>
    %cst = arith.constant dense<0.000000e+00> : vector<8x128xf32>
    %4 = tpu.matmul %0, %3, %cst {dimension_numbers = #tpu.dot_dimension_numbers<[1], [0], [0], [1], [0, 0, 1, 1], [], []>} : vector<8x128xf32>, vector<128x128xf32>, vector<8x128xf32> -> vector<8x128xf32>
    %c0_5 = arith.constant 0 : index
    %c0_6 = arith.constant 0 : index
    %5 = vector.load %arg3[%c0_5, %c0_6] : memref<1x896xf32, #tpu.memory_space<vmem>>, vector<1x128xf32>
    %6 = vector.broadcast %5 : vector<1x128xf32> to vector<8x128xf32>
    %7 = arith.addf %4, %6 : vector<8x128xf32>
    %cst_7 = arith.constant 0.000000e+00 : f32
    %8 = vector.broadcast %cst_7 : f32 to vector<8x128xf32>
    %9 = arith.maximumf %7, %8 : vector<8x128xf32>
    %c0_8 = arith.constant 0 : index
    %c128_9 = arith.constant 128 : index
    %10 = vector.load %arg2[%c0_8, %c128_9] : memref<128x896xf32, #tpu.memory_space<vmem>>, vector<128x128xf32>
    %cst_10 = arith.constant dense<0.000000e+00> : vector<8x128xf32>
    %11 = tpu.matmul %9, %10, %cst_10 {dimension_numbers = #tpu.dot_dimension_numbers<[1], [0], [0], [1], [0, 0, 1, 1], [], []>} : vector<8x128xf32>, vector<128x128xf32>, vector<8x128xf32> -> vector<8x128xf32>
    %c0_11 = arith.constant 0 : index
    %c128_12 = arith.constant 128 : index
    %12 = vector.load %arg3[%c0_11, %c128_12] : memref<1x896xf32, #tpu.memory_space<vmem>>, vector<1x128xf32>
    %13 = vector.broadcast %12 : vector<1x128xf32> to vector<8x128xf32>
    %14 = arith.addf %11, %13 : vector<8x128xf32>
    %cst_13 = arith.constant 0.000000e+00 : f32
    %15 = vector.broadcast %cst_13 : f32 to vector<8x128xf32>
    %16 = arith.maximumf %14, %15 : vector<8x128xf32>
    %c0_14 = arith.constant 0 : index
    %c256_15 = arith.constant 256 : index
    %17 = vector.load %arg2[%c0_14, %c256_15] : memref<128x896xf32, #tpu.memory_space<vmem>>, vector<128x128xf32>
    %cst_16 = arith.constant dense<0.000000e+00> : vector<8x128xf32>
    %18 = tpu.matmul %16, %17, %cst_16 {dimension_numbers = #tpu.dot_dimension_numbers<[1], [0], [0], [1], [0, 0, 1, 1], [], []>} : vector<8x128xf32>, vector<128x128xf32>, vector<8x128xf32> -> vector<8x128xf32>
    %c0_17 = arith.constant 0 : index
    %c256_18 = arith.constant 256 : index
    %19 = vector.load %arg3[%c0_17, %c256_18] : memref<1x896xf32, #tpu.memory_space<vmem>>, vector<1x128xf32>
    %20 = vector.broadcast %19 : vector<1x128xf32> to vector<8x128xf32>
    %21 = arith.addf %18, %20 : vector<8x128xf32>
    %c0_19 = arith.constant 0 : index
    %c384 = arith.constant 384 : index
    %22 = vector.load %arg2[%c0_19, %c384] : memref<128x896xf32, #tpu.memory_space<vmem>>, vector<128x128xf32>
    %cst_20 = arith.constant dense<0.000000e+00> : vector<8x128xf32>
    %23 = tpu.matmul %16, %22, %cst_20 {dimension_numbers = #tpu.dot_dimension_numbers<[1], [0], [0], [1], [0, 0, 1, 1], [], []>} : vector<8x128xf32>, vector<128x128xf32>, vector<8x128xf32> -> vector<8x128xf32>
    %c0_21 = arith.constant 0 : index
    %c384_22 = arith.constant 384 : index
    %24 = vector.load %arg3[%c0_21, %c384_22] : memref<1x896xf32, #tpu.memory_space<vmem>>, vector<1x128xf32>
    %25 = vector.broadcast %24 : vector<1x128xf32> to vector<8x128xf32>
    %26 = arith.addf %23, %25 : vector<8x128xf32>
    %cst_23 = arith.constant 5.000000e-01 : f32
    %27 = vector.broadcast %cst_23 : f32 to vector<8x128xf32>
    %28 = arith.mulf %27, %26 : vector<8x128xf32>
    %29 = math.exp %28 : vector<8x128xf32>
    %30 = arith.mulf %1, %29 : vector<8x128xf32>
    %31 = arith.addf %21, %30 : vector<8x128xf32>
    %32 = arith.addf %31, %2 : vector<8x128xf32>
    %c0_24 = arith.constant 0 : index
    %c512 = arith.constant 512 : index
    %33 = vector.load %arg2[%c0_24, %c512] : memref<128x896xf32, #tpu.memory_space<vmem>>, vector<128x128xf32>
    %cst_25 = arith.constant dense<0.000000e+00> : vector<8x128xf32>
    %34 = tpu.matmul %32, %33, %cst_25 {dimension_numbers = #tpu.dot_dimension_numbers<[1], [0], [0], [1], [0, 0, 1, 1], [], []>} : vector<8x128xf32>, vector<128x128xf32>, vector<8x128xf32> -> vector<8x128xf32>
    %c0_26 = arith.constant 0 : index
    %c512_27 = arith.constant 512 : index
    %35 = vector.load %arg3[%c0_26, %c512_27] : memref<1x896xf32, #tpu.memory_space<vmem>>, vector<1x128xf32>
    %36 = vector.broadcast %35 : vector<1x128xf32> to vector<8x128xf32>
    %37 = arith.addf %34, %36 : vector<8x128xf32>
    %cst_28 = arith.constant 0.000000e+00 : f32
    %38 = vector.broadcast %cst_28 : f32 to vector<8x128xf32>
    %39 = arith.maximumf %37, %38 : vector<8x128xf32>
    %c0_29 = arith.constant 0 : index
    %c640 = arith.constant 640 : index
    %40 = vector.load %arg2[%c0_29, %c640] : memref<128x896xf32, #tpu.memory_space<vmem>>, vector<128x128xf32>
    %cst_30 = arith.constant dense<0.000000e+00> : vector<8x128xf32>
    %41 = tpu.matmul %39, %40, %cst_30 {dimension_numbers = #tpu.dot_dimension_numbers<[1], [0], [0], [1], [0, 0, 1, 1], [], []>} : vector<8x128xf32>, vector<128x128xf32>, vector<8x128xf32> -> vector<8x128xf32>
    %c0_31 = arith.constant 0 : index
    %c640_32 = arith.constant 640 : index
    %42 = vector.load %arg3[%c0_31, %c640_32] : memref<1x896xf32, #tpu.memory_space<vmem>>, vector<1x128xf32>
    %43 = vector.broadcast %42 : vector<1x128xf32> to vector<8x128xf32>
    %44 = arith.addf %41, %43 : vector<8x128xf32>
    %cst_33 = arith.constant 0.000000e+00 : f32
    %45 = vector.broadcast %cst_33 : f32 to vector<8x128xf32>
    %46 = arith.maximumf %44, %45 : vector<8x128xf32>
    %c0_34 = arith.constant 0 : index
    %c768 = arith.constant 768 : index
    %47 = vector.load %arg2[%c0_34, %c768] : memref<128x896xf32, #tpu.memory_space<vmem>>, vector<128x128xf32>
    %cst_35 = arith.constant dense<0.000000e+00> : vector<8x128xf32>
    %48 = tpu.matmul %46, %47, %cst_35 {dimension_numbers = #tpu.dot_dimension_numbers<[1], [0], [0], [1], [0, 0, 1, 1], [], []>} : vector<8x128xf32>, vector<128x128xf32>, vector<8x128xf32> -> vector<8x128xf32>
    %c0_36 = arith.constant 0 : index
    %c768_37 = arith.constant 768 : index
    %49 = vector.load %arg3[%c0_36, %c768_37] : memref<1x896xf32, #tpu.memory_space<vmem>>, vector<1x128xf32>
    %50 = vector.broadcast %49 : vector<1x128xf32> to vector<8x128xf32>
    %51 = arith.addf %48, %50 : vector<8x128xf32>
    %c0_38 = arith.constant 0 : index
    %c0_39 = arith.constant 0 : index
    %52 = vector.load %arg4[%c0_38, %c0_39] : memref<8x512xf32, #tpu.memory_space<vmem>>, vector<8x128xf32>
    tpu.vector_store %arg4[%c0_38, %c0_39], %51 {strides = array<i32>} : memref<8x512xf32, #tpu.memory_space<vmem>>, vector<8x128xf32>,
    %c0_40 = arith.constant 0 : index
    %c128_41 = arith.constant 128 : index
    %53 = vector.load %arg4[%c0_40, %c128_41] : memref<8x512xf32, #tpu.memory_space<vmem>>, vector<8x128xf32>
    tpu.vector_store %arg4[%c0_40, %c128_41], %21 {strides = array<i32>} : memref<8x512xf32, #tpu.memory_space<vmem>>, vector<8x128xf32>,
    %c0_42 = arith.constant 0 : index
    %c256_43 = arith.constant 256 : index
    %54 = vector.load %arg4[%c0_42, %c256_43] : memref<8x512xf32, #tpu.memory_space<vmem>>, vector<8x128xf32>
    tpu.vector_store %arg4[%c0_42, %c256_43], %26 {strides = array<i32>} : memref<8x512xf32, #tpu.memory_space<vmem>>, vector<8x128xf32>,
    %c0_44 = arith.constant 0 : index
    %c384_45 = arith.constant 384 : index
    %55 = vector.load %arg4[%c0_44, %c384_45] : memref<8x512xf32, #tpu.memory_space<vmem>>, vector<8x128xf32>
    tpu.vector_store %arg4[%c0_44, %c384_45], %31 {strides = array<i32>} : memref<8x512xf32, #tpu.memory_space<vmem>>, vector<8x128xf32>,
    return
  }
  func.func @transform_0(%arg0: i32) -> (i32, i32) {
    %c0_i32 = arith.constant 0 : i32
    %c0_i32_0 = arith.constant 0 : i32
    return %arg0, %c0_i32 : i32, i32
  }
  func.func @transform_1(%arg0: i32) -> (i32, i32) {
    %c0_i32 = arith.constant 0 : i32
    %c0_i32_0 = arith.constant 0 : i32
    %c0_i32_1 = arith.constant 0 : i32
    return %c0_i32, %c0_i32_0 : i32, i32
  }
  func.func @transform_2(%arg0: i32) -> (i32, i32) {
    %c0_i32 = arith.constant 0 : i32
    %c0_i32_0 = arith.constant 0 : i32
    %c0_i32_1 = arith.constant 0 : i32
    return %c0_i32, %c0_i32_0 : i32, i32
  }
  func.func @transform_3(%arg0: i32) -> (i32, i32) {
    %c0_i32 = arith.constant 0 : i32
    %c0_i32_0 = arith.constant 0 : i32
    return %arg0, %c0_i32 : i32, i32
  }
}

</mosaic_0001>

<bundles_post_ra>
// kernel: _cvae_forward.1
= control target key start
LH: loop header
LB: loop body
LE: loop exit
PB: predicated region body
PF: predicated region fallthrough
CT: control target
= control target key end

     0   :  { %8 = vsyncpa [#allocation3], 0  ;;  %s1272_s12 = smov [#allocation2]   ;;  %s1422_s0 = inlined_call_operand.vmem [shape: f32[8,384], index: 0, kind: input, shape index: {}]   ;;  %s1423_s1 = inlined_call_operand.hbm [shape: f32[128,896], index: 1, kind: input, shape index: {}]   ;;  %s1424_s2 = inlined_call_operand.vmem [shape: f32[1,896], index: 2, kind: input, shape index: {}]   ;;  %s1425_s3 = inlined_call_operand.vmem [shape: f32[8,512], index: 3, kind: output, shape index: {}]  }
   0x1   :  { %s16_s13 = sshll.u32 %s1272_s12, 4  ;;  %s1248_s16 = scalar_lea.hbm %s1423_s1, 14336  ;;  %s17_s13 = int_to_ptr.vmem [resolvable:$true] %s16_s13 }
   0x2   :  { %p1249_p0 = scmp.ne.s32.totalorder %s1423_s1, %s1248_s16  ;;  %p1252_p1 = scmp.lt.u32.totalorder %s1248_s16, %s1423_s1 }
   0x4   :  { %p1254_p2 = pnand %p1252_p1, %p1249_p0 }
   0x6   :  { %1257 = shalt.err (!%p1254_p2)
}
   0x7   :  { %s1258_s21 = scalar_lea.vmem %s17_s13, 14336  ;;  %p1263_p4 = scmp.lt.s32.totalorder %s17_s13, %s17_s13 }
   0x8   :  { %p1259_p3 = scmp.ne.s32.totalorder %s17_s13, %s1258_s21  ;;  %p1264_p5 = scmp.lt.s32.totalorder %s1258_s21, %s1258_s21 }
   0xa   :  { %p1265_p6 = por %p1264_p5, %p1263_p4 }
   0xc   :  { %p1266_p7 = pnand %p1265_p6, %p1259_p3 }
   0xe   :  { %1269 = shalt.err (!%p1266_p7)
}
   0xf   :  { %s1273_s22 = smov 896   ;;  %s1274_s23 = smov 56  }
  0x10   :  { %22 = dma.hbm_to_vmem [thread:$0]  %s1423_s1, 14336, %s17_s13, [#allocation3], %s1273_s22, %s1273_s22, %s1274_s23  }
  0x11   :  { %1270 = dma.done.wait [#allocation3], 14336  }
  0x12   :  { %1271 = vsyncadd [#allocation3], 4294952960  ;;  %v1275_v0 = vmov 0.0|0.0   ;;  %vm1276_vm0 = vmmov 0   ;;  %v1277_v1 = vmov 0.0   ;;  %v31_v2 = vld [vmem:[#allocation2] sm:$0xff] }
  0x13   :  { %1072 = vmatprep.subr.bf16.mxu0 %v1275_v0  ;;  %859 = vmatprep.mubr.msk.f32.mxu0 %vm1276_vm0, %v1277_v1  ;;  %v32_v3 = vld [vmem:[#allocation2 + $0x38] sm:$0xff]  ;;  %v33_v4 = vld [vmem:[#allocation2 + $0x70] sm:$0xff]  ;;  %v34_v6 = vld [vmem:[#allocation2 + $0xa8] sm:$0xff] }
  0x14   :  { %1096 = vmatprep.subr.bf16.mxu1 %v1275_v0  ;;  %894 = vmatprep.mubr.msk.f32.mxu1 %vm1276_vm0, %v1277_v1  ;;  %v1073_v5 = vpack.c.bf16 %v32_v3, %v31_v2  ;;  %v1076_v7 = vpack.c.bf16 %v34_v6, %v33_v4  ;;  %v35_v8 = vld [vmem:[#allocation2 + $0xe0] sm:$0xff]  ;;  %v36_v9 = vld [vmem:[#allocation2 + $0x118] sm:$0xff]  ;;  %v125_v10 = vld [vmem:[#allocation2 + $0x8] sm:$0xff] }
  0x15   :  { %v126_v11 = vld [vmem:[#allocation2 + $0x40] sm:$0xff]  ;;  %v127_v12 = vld [vmem:[#allocation2 + $0x78] sm:$0xff]  ;;  %v128_v13 = vld [vmem:[#allocation2 + $0xb0] sm:$0xff]  ;;  %v1079_v14 = vpack.c.bf16 %v36_v9, %v35_v8 }
  0x16   :  { %1074 = vmatpush3.bf16.msra.mxu0 %v1073_v5  ;;  %v1097_v15 = vpack.c.bf16 %v126_v11, %v125_v10  ;;  %v37_v16 = vld [vmem:[#allocation2 + $0x150] sm:$0xff]  ;;  %v38_v17 = vld [vmem:[#allocation2 + $0x188] sm:$0xff]  ;;  %v1100_v18 = vpack.c.bf16 %v128_v13, %v127_v12  ;;  %v130_v20 = vld [vmem:[#allocation2 + $0x120] sm:$0xff] }
  0x17   :  { %1075 = vmatprep.subr.bf16.mxu0 %v1275_v0  ;;  %v129_v19 = vld [vmem:[#allocation2 + $0xe8] sm:$0xff]  ;;  %v1082_v21 = vpack.c.bf16 %v38_v17, %v37_v16  ;;  %v39_v22 = vld [vmem:[#allocation2 + $0x1c0] sm:$0xff]  ;;  %v40_v23 = vld [vmem:[#allocation2 + $0x1f8] sm:$0xff] }
  0x18   :  { %1098 = vmatpush3.bf16.msra.mxu1 %v1097_v15  ;;  %v1103_v24 = vpack.c.bf16 %v130_v20, %v129_v19  ;;  %v131_v25 = vld [vmem:[#allocation2 + $0x158] sm:$0xff]  ;;  %v132_v26 = vld [vmem:[#allocation2 + $0x190] sm:$0xff]  ;;  %v1085_v27 = vpack.c.bf16 %v40_v23, %v39_v22  ;;  %v42_v29 = vld [vmem:[#allocation2 + $0x268] sm:$0xff] }
  0x19   :  { %1099 = vmatprep.subr.bf16.mxu1 %v1275_v0  ;;  %v41_v28 = vld [vmem:[#allocation2 + $0x230] sm:$0xff]  ;;  %v1106_v30 = vpack.c.bf16 %v132_v26, %v131_v25  ;;  %v133_v31 = vld [vmem:[#allocation2 + $0x1c8] sm:$0xff]  ;;  %v134_v32 = vld [vmem:[#allocation2 + $0x200] sm:$0xff] }
  0x1a   :  { %1077 = vmatpush3.bf16.msra.mxu0 %v1076_v7  ;;  %v1088_v33 = vpack.c.bf16 %v42_v29, %v41_v28  ;;  %v43_v34 = vld [vmem:[#allocation2 + $0x2a0] sm:$0xff]  ;;  %v44_v35 = vld [vmem:[#allocation2 + $0x2d8] sm:$0xff]  ;;  %v1109_v36 = vpack.c.bf16 %v134_v32, %v133_v31  ;;  %v136_v38 = vld [vmem:[#allocation2 + $0x270] sm:$0xff] }
  0x1b   :  { %1078 = vmatprep.subr.bf16.mxu0 %v1275_v0  ;;  %v135_v37 = vld [vmem:[#allocation2 + $0x238] sm:$0xff]  ;;  %v1091_v39 = vpack.c.bf16 %v44_v35, %v43_v34  ;;  %v45_v40 = vld [vmem:[#allocation2 + $0x310] sm:$0xff]  ;;  %v46_v41 = vld [vmem:[#allocation2 + $0x348] sm:$0xff] }
  0x1c   :  { %1101 = vmatpush3.bf16.msra.mxu1 %v1100_v18  ;;  %v1112_v42 = vpack.c.bf16 %v136_v38, %v135_v37  ;;  %v137_v43 = vld [vmem:[#allocation2 + $0x2a8] sm:$0xff]  ;;  %v138_v44 = vld [vmem:[#allocation2 + $0x2e0] sm:$0xff]  ;;  %v1094_v45 = vpack.c.bf16 %v46_v41, %v45_v40  ;;  %v139_v48 = vld [vmem:[#allocation2 + $0x318] sm:$0xff] }
  0x1d   :  { %1102 = vmatprep.subr.bf16.mxu1 %v1275_v0  ;;  %v1115_v46 = vpack.c.bf16 %v138_v44, %v137_v43  ;;  %v28_v47 = vld [vmem:[%s1422_s0] sm:$0xff]  ;;  %v140_v49 = vld [vmem:[#allocation2 + $0x350] sm:$0xff]  ;;  %v220_v52 = vld [vmem:[#allocation2 + $0x48] sm:$0xff] }
  0x1e   :  { %1080 = vmatpush3.bf16.msra.mxu0 %v1079_v14  ;;  %v1118_v50 = vpack.c.bf16 %v140_v49, %v139_v48  ;;  %v219_v51 = vld [vmem:[#allocation2 + $0x10] sm:$0xff]  ;;  %v221_v54 = vld [vmem:[#allocation2 + $0x80] sm:$0xff]  ;;  %v222_v55 = vld [vmem:[#allocation2 + $0xb8] sm:$0xff] }
  0x1f   :  { %1081 = vmatprep.subr.bf16.mxu0 %v1275_v0  ;;  %v1121_v53 = vpack.c.bf16 %v220_v52, %v219_v51  ;;  %v1124_v56 = vpack.c.bf16 %v222_v55, %v221_v54  ;;  %v223_v57 = vld [vmem:[#allocation2 + $0xf0] sm:$0xff]  ;;  %v224_v58 = vld [vmem:[#allocation2 + $0x128] sm:$0xff]  ;;  %v225_v60 = vld [vmem:[#allocation2 + $0x160] sm:$0xff] }
  0x20   :  { %1104 = vmatpush3.bf16.msra.mxu1 %v1103_v24  ;;  %v1127_v59 = vpack.c.bf16 %v224_v58, %v223_v57  ;;  %v226_v61 = vld [vmem:[#allocation2 + $0x198] sm:$0xff]  ;;  %v227_v63 = vld [vmem:[#allocation2 + $0x1d0] sm:$0xff]  ;;  %v228_v2 = vld [vmem:[#allocation2 + $0x208] sm:$0xff] }
  0x21   :  { %1105 = vmatprep.subr.bf16.mxu1 %v1275_v0  ;;  %v1130_v62 = vpack.c.bf16 %v226_v61, %v225_v60  ;;  %v1133_v3 = vpack.c.bf16 %v228_v2, %v227_v63  ;;  %v229_v4 = vld [vmem:[#allocation2 + $0x240] sm:$0xff]  ;;  %v230_v5 = vld [vmem:[#allocation2 + $0x278] sm:$0xff]  ;;  %v231_v7 = vld [vmem:[#allocation2 + $0x2b0] sm:$0xff] }
  0x22   :  { %1083 = vmatpush3.bf16.msra.mxu0 %v1082_v21  ;;  %v1136_v6 = vpack.c.bf16 %v230_v5, %v229_v4  ;;  %v232_v8 = vld [vmem:[#allocation2 + $0x2e8] sm:$0xff]  ;;  %v701_v10 = vld [vmem:[%s1424_s2] ss:$0 sm:$0xff]  ;;  %v312_v11 = vld [vmem:[#allocation2 + $0x18] sm:$0xff] }
  0x23   :  { %1084 = vmatprep.subr.bf16.mxu0 %v1275_v0  ;;  %v1139_v9 = vpack.c.bf16 %v232_v8, %v231_v7  ;;  %v313_v12 = vld [vmem:[#allocation2 + $0x50] sm:$0xff]  ;;  %v314_v18 = vld [vmem:[#allocation2 + $0x88] sm:$0xff]  ;;  %v315_v19 = vld [vmem:[#allocation2 + $0xc0] sm:$0xff] }
  0x24   :  { %1107 = vmatpush3.bf16.msra.mxu1 %v1106_v30  ;;  %v1145_v16 = vpack.c.bf16 %v313_v12, %v312_v11  ;;  %v1148_v20 = vpack.c.bf16 %v315_v19, %v314_v18  ;;  %v316_v21 = vld [vmem:[#allocation2 + $0xf8] sm:$0xff]  ;;  %v317_v22 = vld [vmem:[#allocation2 + $0x130] sm:$0xff]  ;;  %v318_v24 = vld [vmem:[#allocation2 + $0x168] sm:$0xff] }
  0x25   :  { %1108 = vmatprep.subr.bf16.mxu1 %v1275_v0  ;;  %v1151_v23 = vpack.c.bf16 %v317_v22, %v316_v21  ;;  %v319_v25 = vld [vmem:[#allocation2 + $0x1a0] sm:$0xff]  ;;  %v321_v28 = vld [vmem:[#allocation2 + $0x210] sm:$0xff]  ;;  %v322_v30 = vld [vmem:[#allocation2 + $0x248] sm:$0xff] }
  0x26   :  { %1086 = vmatpush3.bf16.msra.mxu0 %v1085_v27  ;;  %v1154_v26 = vpack.c.bf16 %v319_v25, %v318_v24  ;;  %v320_v27 = vld [vmem:[#allocation2 + $0x1d8] sm:$0xff]  ;;  %v323_v31 = vld [vmem:[#allocation2 + $0x280] sm:$0xff]  ;;  %v325_v34 = vld [vmem:[#allocation2 + $0x2f0] sm:$0xff] }
  0x27   :  { %1087 = vmatprep.subr.bf16.mxu0 %v1275_v0  ;;  %v1157_v29 = vpack.c.bf16 %v321_v28, %v320_v27  ;;  %v1160_v32 = vpack.c.bf16 %v323_v31, %v322_v30  ;;  %v234_v37 = vld [vmem:[#allocation2 + $0x358] sm:$0xff]  ;;  %v326_v38 = vld [vmem:[#allocation2 + $0x328] sm:$0xff]  ;;  %v327_v40 = vld [vmem:[#allocation2 + $0x360] sm:$0xff] }
  0x28   :  { %1110 = vmatpush3.bf16.msra.mxu1 %v1109_v36  ;;  %v233_v36 = vld [vmem:[#allocation2 + $0x320] sm:$0xff]  ;;  %v1166_v41 = vpack.c.bf16 %v327_v40, %v326_v38  ;;  %v412_v44 = vld [vmem:[#allocation2 + $0x58] sm:$0xff]  ;;  %v414_v51 = vld [vmem:[#allocation2 + $0xc8] sm:$0xff] }
  0x29   :  { %1111 = vmatprep.subr.bf16.mxu1 %v1275_v0  ;;  %v411_v43 = vld [vmem:[#allocation2 + $0x20] sm:$0xff]  ;;  %v416_v54 = vld [vmem:[#allocation2 + $0x138] sm:$0xff]  ;;  %v418_v57 = vld [vmem:[#allocation2 + $0x1a8] sm:$0xff] }
  0x2a   :  { %1089 = vmatpush3.bf16.msra.mxu0 %v1088_v33  ;;  %v324_v33 = vld [vmem:[#allocation2 + $0x2b8] sm:$0xff]  ;;  %v1169_v48 = vpack.c.bf16 %v412_v44, %v411_v43  ;;  %v422_v63 = vld [vmem:[#allocation2 + $0x288] sm:$0xff]  ;;  %v512_v19 = vld [vmem:[#allocation2 + $0x1b0] sm:$0xff] }
  0x2b   :  { %1090 = vmatprep.subr.bf16.mxu0 %v1275_v0  ;;  %v1163_v35 = vpack.c.bf16 %v325_v34, %v324_v33  ;;  %v420_v60 = vld [vmem:[#allocation2 + $0x218] sm:$0xff]  ;;  %v426_v7 = vld [vmem:[#allocation2 + $0x368] sm:$0xff]  ;;  %v514_v22 = vld [vmem:[#allocation2 + $0x220] sm:$0xff] }
  0x2c   :  { %1113 = vmatpush3.bf16.msra.mxu1 %v1112_v42  ;;  %v702_v42 = vld [vmem:[%s1424_s2 + $0x1] ss:$0 sm:$0xff]  ;;  %v424_v4 = vld [vmem:[#allocation2 + $0x2f8] sm:$0xff]  ;;  %v513_v21 = vld [vmem:[#allocation2 + $0x1e8] sm:$0xff] }
  0x2d   :  { %1114 = vmatprep.subr.bf16.mxu1 %v1275_v0  ;;  %v507_v11 = vld [vmem:[#allocation2 + $0x98] sm:$0xff]  ;;  %v516_v25 = vld [vmem:[#allocation2 + $0x290] sm:$0xff]  ;;  %v517_v27 = vld [vmem:[#allocation2 + $0x2c8] sm:$0xff] }
  0x2e   :  { %1092 = vmatpush3.bf16.msra.mxu0 %v1091_v39  ;;  %v1142_v39 = vpack.c.bf16 %v234_v37, %v233_v36  ;;  %v511_v18 = vld [vmem:[#allocation2 + $0x178] sm:$0xff]  ;;  %v518_v28 = vld [vmem:[#allocation2 + $0x300] sm:$0xff]  ;;  %v29_v40 = vld [vmem:[%s1422_s0 + $0x8] sm:$0xff] }
  0x2f   :  { %1093 = vmatprep.subr.bf16.mxu0 %v1275_v0  ;;  %v515_v24 = vld [vmem:[#allocation2 + $0x258] sm:$0xff]  ;;  %v703_v30 = vld [vmem:[%s1424_s2 + $0x2] ss:$0 sm:$0xff]  ;;  %v704_v31 = vld [vmem:[%s1424_s2 + $0x3] ss:$0 sm:$0xff] }
  0x30   :  { %1116 = vmatpush3.bf16.msra.mxu1 %v1115_v46  ;;  %v30_v43 = vld [vmem:[%s1422_s0 + $0x10] sm:$0xff] }
  0x31   :  { %1117 = vmatprep.subr.bf16.mxu1 %v1275_v0 }
  0x32   :  { %1095 = vmatpush3.bf16.msra.mxu0 %v1094_v45 }
  0x33   :  { %1120 = vmatprep.subr.bf16.mxu0 %v1275_v0 }
  0x34   :  { %1119 = vmatpush3.bf16.msra.mxu1 %v1118_v50  ;;  %v413_v50 = vld [vmem:[#allocation2 + $0x90] sm:$0xff] }
  0x35   :  { %860 = vmatmul.mubr.f32.vlgmr.msra.gmra.mrb[0].mxu0 %v28_v47  ;;  %1144 = vmatprep.subr.bf16.mxu1 %v1275_v0  ;;  %v1172_v52 = vpack.c.bf16 %v414_v51, %v413_v50  ;;  %v600_v50 = vld [vmem:[#allocation2 + $0x68] sm:$0xff]  ;;  %v601_v51 = vld [vmem:[#allocation2 + $0xa0] sm:$0xff] }
  0x36   :  { %929 = vmatprep.mubr.msk.f32.mxu0 %vm1276_vm0, %v1277_v1  ;;  %1122 = vmatpush3.bf16.msra.mxu0 %v1121_v53  ;;  %v415_v53 = vld [vmem:[#allocation2 + $0x100] sm:$0xff] }
  0x37   :  { %1123 = vmatprep.subr.bf16.mxu0 %v1275_v0  ;;  %v1175_v55 = vpack.c.bf16 %v416_v54, %v415_v53  ;;  %v602_v53 = vld [vmem:[#allocation2 + $0xd8] sm:$0xff] }
  0x38   :  { %v1220_v54 = vpack.c.bf16 %v602_v53, %v601_v51 }
  0x3a   :  { %1125 = vmatpush3.bf16.msra.mxu0 %v1124_v56  ;;  %v417_v56 = vld [vmem:[#allocation2 + $0x170] sm:$0xff] }
  0x3b   :  { %1126 = vmatprep.subr.bf16.mxu0 %v1275_v0  ;;  %v1178_v58 = vpack.c.bf16 %v418_v57, %v417_v56  ;;  %v604_v56 = vld [vmem:[#allocation2 + $0x148] sm:$0xff] }
  0x3e   :  { %1128 = vmatpush3.bf16.msra.mxu0 %v1127_v59  ;;  %v419_v59 = vld [vmem:[#allocation2 + $0x1e0] sm:$0xff] }
  0x3f   :  { %1129 = vmatprep.subr.bf16.mxu0 %v1275_v0  ;;  %v1181_v61 = vpack.c.bf16 %v420_v60, %v419_v59  ;;  %v607_v60 = vld [vmem:[#allocation2 + $0x1f0] sm:$0xff] }
  0x42   :  { %1131 = vmatpush3.bf16.msra.mxu0 %v1130_v62  ;;  %v421_v62 = vld [vmem:[#allocation2 + $0x250] sm:$0xff] }
  0x43   :  { %1132 = vmatprep.subr.bf16.mxu0 %v1275_v0  ;;  %v1184_v2 = vpack.c.bf16 %v422_v63, %v421_v62  ;;  %v609_v63 = vld [vmem:[#allocation2 + $0x260] sm:$0xff] }
  0x46   :  { %1134 = vmatpush3.bf16.msra.mxu0 %v1133_v3  ;;  %v423_v3 = vld [vmem:[#allocation2 + $0x2c0] sm:$0xff] }
  0x47   :  { %1135 = vmatprep.subr.bf16.mxu0 %v1275_v0  ;;  %v1187_v5 = vpack.c.bf16 %v424_v4, %v423_v3  ;;  %v611_v4 = vld [vmem:[#allocation2 + $0x2d0] sm:$0xff] }
  0x4a   :  { %1137 = vmatpush3.bf16.msra.mxu0 %v1136_v6  ;;  %v425_v6 = vld [vmem:[#allocation2 + $0x330] sm:$0xff] }
  0x4b   :  { %1138 = vmatprep.subr.bf16.mxu0 %v1275_v0  ;;  %v1190_v8 = vpack.c.bf16 %v426_v7, %v425_v6  ;;  %v705_v7 = vld [vmem:[%s1424_s2 + $0x4] ss:$0 sm:$0xff] }
  0x4e   :  { %1140 = vmatpush3.bf16.msra.mxu0 %v1139_v9  ;;  %v505_v9 = vld [vmem:[#allocation2 + $0x28] sm:$0xff] }
  0x4f   :  { %1141 = vmatprep.subr.bf16.mxu0 %v1275_v0 }
  0x52   :  { %1143 = vmatpush3.bf16.msra.mxu0 %v1142_v39 }
  0x53   :  { %1168 = vmatprep.subr.bf16.mxu0 %v1275_v0 }
 0x108   :  { %v120_v13 = vpop.f32.mrb[0].mxu0 }
 0x109   :  { %v121_v14 = vadd.f32 %v701_v10, %v120_v13  ;;  %v861_v15 = vpop.f32.mrb[1].mxu0  ;;  %v506_v10 = vld [vmem:[#allocation2 + $0x60] sm:$0xff]  ;;  %v508_v13 = vld [vmem:[#allocation2 + $0xd0] sm:$0xff] }
 0x10a   :  { %v1193_v12 = vpack.c.bf16 %v506_v10, %v505_v9  ;;  %v509_v15 = vld [vmem:[#allocation2 + $0x108] sm:$0xff] }
 0x10b   :  { %v124_v17 = vmax.f32 %v121_v14, 0.0  ;;  %v1196_v14 = vpack.c.bf16 %v508_v13, %v507_v11  ;;  %v614_v13 = vld [vmem:[#allocation2 + $0x378] sm:$0xff] }
 0x10d   :  { %895 = vmatmul.mubr.f32.vlgmr.msra.gmra.mrb[0].mxu1 %v124_v17 }
 0x10e   :  { %1146 = vmatpush3.bf16.msra.mxu1 %v1145_v16  ;;  %964 = vmatprep.mubr.msk.f32.mxu1 %vm1276_vm0, %v1277_v1  ;;  %v510_v16 = vld [vmem:[#allocation2 + $0x140] sm:$0xff] }
 0x10f   :  { %1147 = vmatprep.subr.bf16.mxu1 %v1275_v0  ;;  %v1199_v17 = vpack.c.bf16 %v510_v16, %v509_v15  ;;  %v706_v15 = vld [vmem:[%s1424_s2 + $0x5] ss:$0 sm:$0xff] }
 0x112   :  { %1149 = vmatpush3.bf16.msra.mxu1 %v1148_v20  ;;  %v1202_v20 = vpack.c.bf16 %v512_v19, %v511_v18  ;;  %v707_v19 = vld [vmem:[%s1424_s2 + $0x6] ss:$0 sm:$0xff] }
 0x113   :  { %1150 = vmatprep.subr.bf16.mxu1 %v1275_v0 }
 0x116   :  { %1152 = vmatpush3.bf16.msra.mxu1 %v1151_v23  ;;  %v1205_v23 = vpack.c.bf16 %v514_v22, %v513_v21 }
 0x117   :  { %1153 = vmatprep.subr.bf16.mxu1 %v1275_v0 }
 0x11a   :  { %1155 = vmatpush3.bf16.msra.mxu1 %v1154_v26  ;;  %v1208_v26 = vpack.c.bf16 %v516_v25, %v515_v24 }
 0x11b   :  { %1156 = vmatprep.subr.bf16.mxu1 %v1275_v0 }
 0x11e   :  { %1158 = vmatpush3.bf16.msra.mxu1 %v1157_v29  ;;  %v1211_v29 = vpack.c.bf16 %v518_v28, %v517_v27 }
 0x11f   :  { %1159 = vmatprep.subr.bf16.mxu1 %v1275_v0 }
 0x122   :  { %1161 = vmatpush3.bf16.msra.mxu1 %v1160_v32 }
 0x123   :  { %1162 = vmatprep.subr.bf16.mxu1 %v1275_v0 }
 0x126   :  { %1164 = vmatpush3.bf16.msra.mxu1 %v1163_v35 }
 0x127   :  { %1165 = vmatprep.subr.bf16.mxu1 %v1275_v0 }
 0x12a   :  { %1167 = vmatpush3.bf16.msra.mxu1 %v1166_v41 }
 0x12b   :  { %1192 = vmatprep.subr.bf16.mxu1 %v1275_v0 }
 0x1e0   :  { %v214_v45 = vpop.f32.mrb[0].mxu1 }
 0x1e1   :  { %v215_v46 = vadd.f32 %v702_v42, %v214_v45  ;;  %v896_v47 = vpop.f32.mrb[1].mxu1 }
 0x1e2   :  { %v520_v47 = vld [vmem:[#allocation2 + $0x370] sm:$0xff] }
 0x1e3   :  { %v218_v49 = vmax.f32 %v215_v46, 0.0  ;;  %v519_v46 = vld [vmem:[#allocation2 + $0x338] sm:$0xff] }
 0x1e5   :  { %930 = vmatmul.mubr.f32.vlgmr.msra.gmra.mrb[2].mxu0 %v218_v49  ;;  %965 = vmatmul.mubr.f32.vlgmr.msra.gmra.mrb[2].mxu1 %v218_v49  ;;  %v599_v49 = vld [vmem:[#allocation2 + $0x30] sm:$0xff] }
 0x1e6   :  { %1170 = vmatpush3.bf16.msra.mxu0 %v1169_v48  ;;  %999 = vmatprep.mubr.msk.f32.mxu0 %vm1276_vm0, %v1277_v1  ;;  %v1214_v48 = vpack.c.bf16 %v520_v47, %v519_v46 }
 0x1e7   :  { %1171 = vmatprep.subr.bf16.mxu0 %v1275_v0  ;;  %1034 = vmatprep.mubr.msk.f32.mxu1 %vm1276_vm0, %v1277_v1 }
 0x1e8   :  { %1194 = vmatpush3.bf16.msra.mxu1 %v1193_v12  ;;  %v613_v12 = vld [vmem:[#allocation2 + $0x340] sm:$0xff] }
 0x1e9   :  { %1195 = vmatprep.subr.bf16.mxu1 %v1275_v0 }
 0x1ea   :  { %1173 = vmatpush3.bf16.msra.mxu0 %v1172_v52  ;;  %v1217_v52 = vpack.c.bf16 %v600_v50, %v599_v49 }
 0x1eb   :  { %1174 = vmatprep.subr.bf16.mxu0 %v1275_v0 }
 0x1ec   :  { %1197 = vmatpush3.bf16.msra.mxu1 %v1196_v14  ;;  %v1238_v14 = vpack.c.bf16 %v614_v13, %v613_v12 }
 0x1ed   :  { %1198 = vmatprep.subr.bf16.mxu1 %v1275_v0 }
 0x1ee   :  { %1176 = vmatpush3.bf16.msra.mxu0 %v1175_v55  ;;  %v603_v55 = vld [vmem:[#allocation2 + $0x110] sm:$0xff] }
 0x1ef   :  { %1177 = vmatprep.subr.bf16.mxu0 %v1275_v0  ;;  %v1223_v57 = vpack.c.bf16 %v604_v56, %v603_v55 }
 0x1f0   :  { %1200 = vmatpush3.bf16.msra.mxu1 %v1199_v17 }
 0x1f1   :  { %1201 = vmatprep.subr.bf16.mxu1 %v1275_v0 }
 0x1f2   :  { %1179 = vmatpush3.bf16.msra.mxu0 %v1178_v58  ;;  %v606_v58 = vld [vmem:[#allocation2 + $0x1b8] sm:$0xff] }
 0x1f3   :  { %1180 = vmatprep.subr.bf16.mxu0 %v1275_v0 }
 0x1f4   :  { %1203 = vmatpush3.bf16.msra.mxu1 %v1202_v20 }
 0x1f5   :  { %1204 = vmatprep.subr.bf16.mxu1 %v1275_v0 }
 0x1f6   :  { %1182 = vmatpush3.bf16.msra.mxu0 %v1181_v61  ;;  %v608_v61 = vld [vmem:[#allocation2 + $0x228] sm:$0xff] }
 0x1f7   :  { %1183 = vmatprep.subr.bf16.mxu0 %v1275_v0  ;;  %v1229_v62 = vpack.c.bf16 %v608_v61, %v607_v60 }
 0x1f8   :  { %1206 = vmatpush3.bf16.msra.mxu1 %v1205_v23 }
 0x1f9   :  { %1207 = vmatprep.subr.bf16.mxu1 %v1275_v0 }
 0x1fa   :  { %1185 = vmatpush3.bf16.msra.mxu0 %v1184_v2  ;;  %v610_v2 = vld [vmem:[#allocation2 + $0x298] sm:$0xff] }
 0x1fb   :  { %1186 = vmatprep.subr.bf16.mxu0 %v1275_v0  ;;  %v1232_v3 = vpack.c.bf16 %v610_v2, %v609_v63 }
 0x1fc   :  { %1209 = vmatpush3.bf16.msra.mxu1 %v1208_v26 }
 0x1fd   :  { %1210 = vmatprep.subr.bf16.mxu1 %v1275_v0 }
 0x1fe   :  { %1188 = vmatpush3.bf16.msra.mxu0 %v1187_v5  ;;  %v612_v5 = vld [vmem:[#allocation2 + $0x308] sm:$0xff] }
 0x1ff   :  { %1189 = vmatprep.subr.bf16.mxu0 %v1275_v0  ;;  %v1235_v6 = vpack.c.bf16 %v612_v5, %v611_v4 }
 0x200   :  { %1212 = vmatpush3.bf16.msra.mxu1 %v1211_v29 }
 0x201   :  { %1213 = vmatprep.subr.bf16.mxu1 %v1275_v0 }
 0x202   :  { %1191 = vmatpush3.bf16.msra.mxu0 %v1190_v8 }
 0x203   :  { %1216 = vmatprep.subr.bf16.mxu0 %v1275_v0 }
 0x204   :  { %1215 = vmatpush3.bf16.msra.mxu1 %v1214_v48 }
 0x2b8   :  { %v308_v32 = vpop.f32.mrb[2].mxu0  ;;  %v401_v33 = vpop.f32.mrb[2].mxu1 }
 0x2b9   :  { %v309_v34 = vadd.f32 %v703_v30, %v308_v32  ;;  %v402_v35 = vadd.f32 %v704_v31, %v401_v33  ;;  %v931_v36 = vpop.f32.mrb[3].mxu0  ;;  %v966_v37 = vpop.f32.mrb[3].mxu1 }
 0x2bb   :  { %693 = vst [vmem:[%s1425_s3 + $0x8] sm:$0xff] %v309_v34  ;;  %v405_v38 = vmul.f32 0.5, %v402_v35  ;;  %694 = vst [vmem:[%s1425_s3 + $0x10] sm:$0xff] %v402_v35 }
 0x2bd   :  { %v406_v39 = vmul.f32 1.442695, %v405_v38 }
 0x2bf   :  { %1246 = vpow2.f32 %v406_v39 }
 0x2c9   :  { %v1247_v41 = vpop.eup %1246 }
 0x2ca   :  { %v408_v42 = vmul.f32 %v1247_v41, %v29_v40 }
 0x2cc   :  { %v409_v44 = vadd.f32 %v408_v42, %v309_v34 }
 0x2ce   :  { %v410_v45 = vadd.f32 %v409_v44, %v30_v43  ;;  %695 = vst [vmem:[%s1425_s3 + $0x18] sm:$0xff] %v409_v44 }
 0x2d0   :  { %1000 = vmatmul.mubr.f32.vlgmr.msra.gmra.mrb[4].mxu0 %v410_v45 }
 0x2d1   :  { %1069 = vmatprep.mubr.msk.f32.mxu0 %vm1276_vm0, %v1277_v1  ;;  %1218 = vmatpush3.bf16.msra.mxu0 %v1217_v52  ;;  %v605_v1 = vld [vmem:[#allocation2 + $0x180] sm:$0xff] }
 0x2d2   :  { %1219 = vmatprep.subr.bf16.mxu0 %v1275_v0  ;;  %v1226_v59 = vpack.c.bf16 %v606_v58, %v605_v1 }
 0x2d5   :  { %1221 = vmatpush3.bf16.msra.mxu0 %v1220_v54 }
 0x2d6   :  { %1222 = vmatprep.subr.bf16.mxu0 %v1275_v0 }
 0x2d9   :  { %1224 = vmatpush3.bf16.msra.mxu0 %v1223_v57 }
 0x2da   :  { %1225 = vmatprep.subr.bf16.mxu0 %v1275_v0 }
 0x2dd   :  { %1227 = vmatpush3.bf16.msra.mxu0 %v1226_v59 }
 0x2de   :  { %1228 = vmatprep.subr.bf16.mxu0 %v1275_v0 }
 0x2e1   :  { %1230 = vmatpush3.bf16.msra.mxu0 %v1229_v62 }
 0x2e2   :  { %1231 = vmatprep.subr.bf16.mxu0 %v1275_v0 }
 0x2e5   :  { %1233 = vmatpush3.bf16.msra.mxu0 %v1232_v3 }
 0x2e6   :  { %1234 = vmatprep.subr.bf16.mxu0 %v1275_v0 }
 0x2e9   :  { %1236 = vmatpush3.bf16.msra.mxu0 %v1235_v6 }
 0x2ea   :  { %1237 = vmatprep.subr.bf16.mxu0 %v1275_v0 }
 0x2ed   :  { %1239 = vmatpush3.bf16.msra.mxu0 %v1238_v14 }
 0x3a3   :  { %v500_v8 = vpop.f32.mrb[4].mxu0 }
 0x3a4   :  { %v501_v9 = vadd.f32 %v705_v7, %v500_v8  ;;  %v1001_v10 = vpop.f32.mrb[5].mxu0 }
 0x3a6   :  { %v504_v11 = vmax.f32 %v501_v9, 0.0 }
 0x3a8   :  { %1035 = vmatmul.mubr.f32.vlgmr.msra.gmra.mrb[4].mxu1 %v504_v11 }
 0x47b   :  { %v594_v16 = vpop.f32.mrb[4].mxu1 }
 0x47c   :  { %v595_v17 = vadd.f32 %v706_v15, %v594_v16  ;;  %v1036_v0 = vpop.f32.mrb[5].mxu1 }
 0x47e   :  { %v598_v18 = vmax.f32 %v595_v17, 0.0 }
 0x480   :  { %1070 = vmatmul.mubr.f32.vlgmr.msra.gmra.mrb[6].mxu0 %v598_v18 }
 0x553   :  { %v688_v20 = vpop.f32.mrb[6].mxu0 }
 0x554   :  { %v689_v21 = vadd.f32 %v707_v19, %v688_v20  ;;  %v1071_v22 = vpop.f32.mrb[7].mxu0 }
 0x556   :  { %692 = vst [vmem:[%s1425_s3] sm:$0xff] %v689_v21 }
 0x557   :  { %700 = vsyncpa [#allocation3], 1 }

</bundles_post_ra>
